<compile_context>
chip_gen: v6e
topology: v6e:2x2x1
jax: 0.10.0
libtpu: 0.0.40
codegen_flags: <defaults>
</compile_context>

<pallas_src>
import functools

import jax
import jax.numpy as jnp
from jax.experimental import pallas as pl
from jax.experimental.pallas import tpu as pltpu


def _pointwise_kernel(wt_ref, x_ref, o_ref):
    # wt_ref: (NP, C)  resident transposed weight (f32)
    # x_ref : (C, T)   lane-dense pixel-column tile in native NCHW layout
    # o_ref : (NP, T)  lane-dense output tile
    x = x_ref[...].astype(jnp.float32)  # module's .float() cast; no-op for f32
    o_ref[...] = jnp.dot(
        wt_ref[...], x, preferred_element_type=jnp.float32
    ).astype(o_ref.dtype)


@functools.partial(jax.jit, static_argnames=("heads", "t_hw_max"))
def group_point_wise(x_nchw, w, *, heads, t_hw_max=2048):
    """x_nchw: (B, C, H, W); w: (C, heads, P) -> out: (B, heads, H, W, P) f32."""
    B, C, H, W = x_nchw.shape
    Cw, n_heads, P = w.shape
    assert Cw == C and n_heads == heads
    NP = heads * P
    HW = H * W

    # Free reshape: NCHW is contiguous, (B, C, H, W) -> (B, C, H*W) moves no data.
    # Keep the native dtype; the f32 cast happens inside the kernel.
    x3d = x_nchw.reshape(B, C, HW)
    # Tiny (NP, C) weight; transpose + cast cost is negligible.
    wt = jnp.transpose(w.reshape(C, NP), (1, 0)).astype(jnp.float32)

    # HW tile selection:
    #   * HW divisible by 128        -> 128-aligned tiles (unmasked stores).
    #   * HW fits one tile           -> full-extent block (always legal).
    #   * large, non-128-aligned HW  -> 128-aligned tiles; Pallas masks the
    #                                   ragged last block (HW is not reduced).
    if HW % 128 == 0:
        t_hw = min(HW, t_hw_max)
    elif HW <= t_hw_max:
        t_hw = HW
    else:
        t_hw = t_hw_max

    grid = (B, pl.cdiv(HW, t_hw))

    out3d = pl.pallas_call(
        _pointwise_kernel,
        out_shape=jax.ShapeDtypeStruct((B, NP, HW), jnp.float32),
        grid_spec=pltpu.PrefetchScalarGridSpec(
            num_scalar_prefetch=0,
            grid=grid,
            in_specs=[
                # Full weight, constant index_map -> fetched once, stays resident.
                pl.BlockSpec((NP, C), lambda b, j: (0, 0)),
                # One batch element, full C, lane-dense HW tile.
                pl.BlockSpec((None, C, t_hw), lambda b, j: (b, 0, j)),
            ],
            out_specs=pl.BlockSpec((None, NP, t_hw), lambda b, j: (b, 0, j)),
        ),
        compiler_params=pltpu.CompilerParams(
            dimension_semantics=("parallel", "parallel"),
        ),
    )(wt, x3d)

    # (B, heads*P, HW) -> (B, heads, P, H, W) -> (B, heads, H, W, P)
    out = out3d.reshape(B, heads, P, H, W)
    out = jnp.transpose(out, (0, 1, 3, 4, 2))
    return out


def reference(x_nchw, w):
    x_nhwc = jnp.transpose(x_nchw, (0, 2, 3, 1)).astype(jnp.float32)
    return jnp.einsum("bhwc,cnp->bnhwp", x_nhwc, w.astype(jnp.float32))


if __name__ == "__main__":
    # Module config: in_channels=32, heads=4, proj_factor=1, target_dimension=None
    #   -> proj_channels = 32, P = proj_channels // heads = 8
    B, C, H, W = 2, 32, 16, 16
    heads = 4
    P = (C // 1) // heads

    key = jax.random.PRNGKey(0)
    kx, kw = jax.random.split(key)
    x = jax.random.normal(kx, (B, C, H, W), dtype=jnp.float32)
    # nn.init.normal_(w, std=0.01)
    w = 0.01 * jax.random.normal(kw, (C, heads, P), dtype=jnp.float32)

    out = group_point_wise(x, w, heads=heads)
    out = jax.block_until_ready(out)

    ref = reference(x, w)
    assert out.shape == (B, heads, H, W, P), out.shape
    assert jnp.allclose(out, ref, atol=1e-5, rtol=1e-5), float(
        jnp.max(jnp.abs(out - ref))
    )

    # Secondary check: spatial size not a multiple of 128 (full-extent HW block path).
    B2, H2, W2 = 3, 10, 10
    x2 = jax.random.normal(jax.random.PRNGKey(1), (B2, C, H2, W2), dtype=jnp.float32)
    out2 = jax.block_until_ready(group_point_wise(x2, w, heads=heads))
    ref2 = reference(x2, w)
    assert out2.shape == (B2, heads, H2, W2, P), out2.shape
    assert jnp.allclose(out2, ref2, atol=1e-5, rtol=1e-5), float(
        jnp.max(jnp.abs(out2 - ref2))
    )

    # Third check: large non-128-aligned HW forces the masked ragged-tile path.
    B3, H3, W3 = 1, 33, 65  # HW = 2145, > t_hw_max? no, but force small tiles:
    x3 = jax.random.normal(jax.random.PRNGKey(2), (B3, C, H3, W3), dtype=jnp.float32)
    out3 = jax.block_until_ready(group_point_wise(x3, w, heads=heads, t_hw_max=512))
    ref3 = reference(x3, w)
    assert out3.shape == (B3, heads, H3, W3, P), out3.shape
    assert jnp.allclose(out3, ref3, atol=1e-5, rtol=1e-5), float(
        jnp.max(jnp.abs(out3 - ref3))
    )

    print("KERNEL_OK")
</pallas_src>

<mosaic_0001>
module attributes {stable_mosaic.version = 11 : i64} {
  func.func @_pointwise_kernel(%arg0: i32, %arg1: i32, %arg2: memref<32x32xf32, #tpu.memory_space<vmem>>, %arg3: memref<1x32x256xf32, #tpu.memory_space<vmem>>, %arg4: memref<1x32x256xf32, #tpu.memory_space<vmem>>) attributes {dimension_semantics = [#tpu.dimension_semantics<parallel>, #tpu.dimension_semantics<parallel>], iteration_bounds = array<i64: 2, 1>, scalar_prefetch = 0 : i64, scratch_operands = 0 : i64, tpu.core_type = #tpu.core_type<tc>, window_params = [{pipeline_mode = #tpu.pipeline_mode<synchronous>, transform_indices = @transform_0, window_bounds = array<i64: 32, 32>}, {transform_indices = @transform_1, window_bounds = array<i64: 1, 32, 256>}, {transform_indices = @transform_2, window_bounds = array<i64: 1, 32, 256>}]} {
    %c0 = arith.constant 0 : index
    %c0_0 = arith.constant 0 : index
    %c0_1 = arith.constant 0 : index
    %0 = vector.load %arg3[%c0, %c0_0, %c0_1] : memref<1x32x256xf32, #tpu.memory_space<vmem>>, vector<1x32x256xf32>
    %1 = vector.shape_cast %0 : vector<1x32x256xf32> to vector<32x256xf32>
    %c0_2 = arith.constant 0 : index
    %c0_3 = arith.constant 0 : index
    %2 = vector.load %arg2[%c0_2, %c0_3] : memref<32x32xf32, #tpu.memory_space<vmem>>, vector<32x32xf32>
    %cst = arith.constant dense<0.000000e+00> : vector<32x256xf32>
    %3 = tpu.matmul %2, %1, %cst {dimension_numbers = #tpu.dot_dimension_numbers<[1], [0], [0], [1], [0, 0, 1, 1], [], []>} : vector<32x32xf32>, vector<32x256xf32>, vector<32x256xf32> -> vector<32x256xf32>
    %c0_4 = arith.constant 0 : index
    %c0_5 = arith.constant 0 : index
    %c0_6 = arith.constant 0 : index
    %4 = vector.load %arg4[%c0_4, %c0_5, %c0_6] : memref<1x32x256xf32, #tpu.memory_space<vmem>>, vector<1x32x256xf32>
    %5 = vector.shape_cast %4 : vector<1x32x256xf32> to vector<32x256xf32>
    %6 = vector.shape_cast %3 : vector<32x256xf32> to vector<1x32x256xf32>
    tpu.vector_store %arg4[%c0_4, %c0_5, %c0_6], %6 {strides = array<i32>} : memref<1x32x256xf32, #tpu.memory_space<vmem>>, vector<1x32x256xf32>,
    return
  }
  func.func @transform_0(%arg0: i32, %arg1: i32) -> (i32, i32) {
    %c0_i32 = arith.constant 0 : i32
    %c0_i32_0 = arith.constant 0 : i32
    %c0_i32_1 = arith.constant 0 : i32
    return %c0_i32, %c0_i32_0 : i32, i32
  }
  func.func @transform_1(%arg0: i32, %arg1: i32) -> (i32, i32, i32) {
    %c0_i32 = arith.constant 0 : i32
    %c0_i32_0 = arith.constant 0 : i32
    return %arg0, %c0_i32, %arg1 : i32, i32, i32
  }
  func.func @transform_2(%arg0: i32, %arg1: i32) -> (i32, i32, i32) {
    %c0_i32 = arith.constant 0 : i32
    %c0_i32_0 = arith.constant 0 : i32
    return %arg0, %c0_i32, %arg1 : i32, i32, i32
  }
}

</mosaic_0001>

<bundles_post_ra>
// kernel: group_point_wise.1
= control target key start
LH: loop header
LB: loop body
LE: loop exit
PB: predicated region body
PF: predicated region fallthrough
CT: control target
= control target key end

     0   :  { %s482_s9 = smov 0   ;;  %s484_s10 = smov 0   ;;  %s534_s0 = inlined_call_operand.vmem [shape: f32[32,32], index: 0, kind: input, shape index: {}]   ;;  %s535_s1 = inlined_call_operand.vmem [shape: f32[2,32,256], index: 1, kind: input, shape index: {}]   ;;  %s536_s2 = inlined_call_operand.vmem [shape: f32[2,32,256], index: 2, kind: output, shape index: {}]  }
   0x1   :  { %s486_s11 = smov 0  }
   0x2 LB: > { %s24_s12 = sadd.s32 1, %s460_s10  ;;  %p396_p0 = scmp.ge.s32.totalorder %s464_s11, 1  ;;  %s464_s11 = sphi %s486_s11, %s12_s11   ;;  %s460_s10 = sphi %s484_s10, %s538_s10   ;;  %s456_s9 = sphi %s482_s9, %s537_s9  }
   0x3   : > { %p26_p1 = scmp.ge.s32.totalorder %s24_s12, 2  ;;  %p133_p2 = scmp.lt.s32.totalorder %s464_s11, 3 }
   0x5   : > { %s540_s12 = smov (%p26_p1, %s24_s12), 0  ;;  %p134_p3 = pnand %p396_p0, %p133_p2 }
   0x6   : > { %p164_p4 = scmp.lt.s32.totalorder (!%p134_p3), %s456_s9, 1 }
   0x7   : > { %137 = sbr.rel (%p134_p3) target bundleno = 224 (0xe0), region = 28 }
   0xc   : > { %v466_v0 = vmov 0.0   ;;  %s542_s9 = smov (!%p164_p4, %s456_s9), 1  ;;  %v191_v9 = vld [vmem:[%s534_s0] sm:$0xff]  ;;  %vm195_vm0 = vcmask 261120   ;;  %v193_v10 = vld [vmem:[%s534_s0 + $0x10] sm:$0xff]  ;;  %v192_v11 = vld [vmem:[%s534_s0 + $0x8] sm:$0xff] }
   0xd   : > { %272 = vmatprep.mubr.f32.mxu0 %v466_v0  ;;  %284 = vmatprep.mubr.f32.mxu1 %v466_v0  ;;  %s407_s13 = sshll.u32 %s542_s9, 6  ;;  %v194_v12 = vld [vmem:[%s534_s0 + $0x18] sm:$0xff] }
   0xe   : > { %s171_s16 = scalar_lea.vmem %s535_s1, %s407_s13  ;;  %s181_s27 = scalar_lea.vmem %s536_s2, %s407_s13 }
   0xf   : > { %v190_v1 = vld [vmem:[%s171_s16 + $0x38] sm:$0xff]  ;;  %v189_v2 = vld [vmem:[%s171_s16 + $0x30] sm:$0xff]  ;;  %v188_v3 = vld [vmem:[%s171_s16 + $0x28] sm:$0xff] }
  0x10   : > { %232 = vmatprep.subr.mxu0 %v190_v1  ;;  %409 = vmatprep.subr.mxu1 %v190_v1  ;;  %v187_v4 = vld [vmem:[%s171_s16 + $0x20] sm:$0xff]  ;;  %v186_v5 = vld [vmem:[%s171_s16 + $0x18] sm:$0xff]  ;;  %v185_v6 = vld [vmem:[%s171_s16 + $0x10] sm:$0xff] }
  0x11   : > { %233 = vmatpush1.msra.mxu0 %v189_v2  ;;  %413 = vmatpush1.msra.mxu1 %v189_v2  ;;  %v184_v7 = vld [vmem:[%s171_s16 + $0x8] sm:$0xff]  ;;  %v183_v8 = vld [vmem:[%s171_s16] sm:$0xff] }
  0x12   : > { %234 = vmatprep.subr.mxu0 %v188_v3  ;;  %410 = vmatprep.subr.mxu1 %v188_v3 }
  0x13   : > { %235 = vmatpush1.msra.mxu0 %v187_v4  ;;  %414 = vmatpush1.msra.mxu1 %v187_v4 }
  0x14   : > { %236 = vmatprep.subr.mxu0 %v186_v5  ;;  %411 = vmatprep.subr.mxu1 %v186_v5 }
  0x15   : > { %237 = vmatpush1.msra.mxu0 %v185_v6  ;;  %415 = vmatpush1.msra.mxu1 %v185_v6 }
  0x16   : > { %238 = vmatprep.subr.mxu0 %v184_v7  ;;  %412 = vmatprep.subr.mxu1 %v184_v7 }
  0x17   : > { %239 = vmatpush1.msra.mxu0 %v183_v8  ;;  %416 = vmatpush1.msra.mxu1 %v183_v8 }
  0x18   : > { %401 = vmatmul.mubr.msk.f32.vlgmr.msra.gmra.mxu0 %vm195_vm0, %v191_v9  ;;  %403 = vmatmul.mubr.msk.f32.vlgmr.msra.gmra.mxu1 %vm195_vm0, %v193_v10 }
  0x19   : > { %278 = vmatprep.mubr.f32.mxu0 %v466_v0  ;;  %290 = vmatprep.mubr.f32.mxu1 %v466_v0 }
  0x1c   : > { %402 = vmatmul.mubr.msk.f32.gmra.mxu0 %vm195_vm0, %v192_v11  ;;  %404 = vmatmul.mubr.msk.f32.gmra.mxu1 %vm195_vm0, %v194_v12 }
  0xd8   : > { %v274_v13 = vpop.f32.mrf.mxu0  ;;  %v286_v14 = vpop.f32.mrf.mxu1 }
  0xd9   : > { %297 = vst [vmem:[%s181_s27] sm:$0xff] %v274_v13  ;;  %301 = vst [vmem:[%s181_s27 + $0x20] sm:$0xff] %v286_v14 }
  0xda   : > { %v276_v15 = vpop.f32.mrf.mxu0  ;;  %v288_v16 = vpop.f32.mrf.mxu1 }
  0xdb   : > { %298 = vst [vmem:[%s181_s27 + $0x8] sm:$0xff] %v276_v15  ;;  %302 = vst [vmem:[%s181_s27 + $0x28] sm:$0xff] %v288_v16 }
  0xdc   : > { %v280_v17 = vpop.f32.mrf.mxu0  ;;  %v292_v18 = vpop.f32.mrf.mxu1 }
  0xdd   : > { %299 = vst [vmem:[%s181_s27 + $0x10] sm:$0xff] %v280_v17  ;;  %303 = vst [vmem:[%s181_s27 + $0x30] sm:$0xff] %v292_v18 }
  0xde   : > { %v282_v19 = vpop.f32.mrf.mxu0  ;;  %v294_v20 = vpop.f32.mrf.mxu1 }
  0xdf   : > { %300 = vst [vmem:[%s181_s27 + $0x18] sm:$0xff] %v282_v19  ;;  %304 = vst [vmem:[%s181_s27 + $0x38] sm:$0xff] %v294_v20 }
  0xe0 PF: > { %s12_s11 = sadd.s32 1, %s464_s11   ;;  %s537_s9 = smov %s460_s10 }
  0xe1   : > { %p9_p5 = scmp.ge.s32.totalorder %s12_s11, 4   ;;  %s538_s10 = smov %s540_s12 }
  0xe3   :  { %11 = sbr.rel (!%p9_p5) target bundleno = 2 (0x2), region = 58 }

</bundles_post_ra>
